<compile_context>
chip_gen: v7x
topology: tpu7x:2x2x1
jax: 0.10.0
libtpu: 0.0.40
codegen_flags: <defaults>
</compile_context>

<pallas_src>
import functools

import jax
import jax.numpy as jnp
from jax import lax
from jax.experimental import pallas as pl
from jax.experimental.pallas import tpu as pltpu

H1 = 32   # fc1 out
H2 = 32   # fc2 out
OUT = 1   # fc3 out


def _round_up(x, m):
    return (x + m - 1) // m * m


def cryptnet_kernel(x_ref, w1_ref, b1_ref, w2_ref, b2_ref, w3_ref, b3_ref,
                    out_ref):
    """One batch tile: sigmoid(W3·relu(W2·relu(W1·xᵀ + b1) + b2) + b3).

    All intermediates are (features, TM): features on sublanes, batch on the
    128-lane axis, so the single-output last layer lands lane-dense.
    """
    x = x_ref[...]                                       # (TM, D)

    # fc1: contract W1 (H1, D) with x (TM, D) over D  ->  (H1, TM)   [A·Bᵀ on MXU]
    h = lax.dot_general(
        w1_ref[...], x,
        dimension_numbers=(((1,), (1,)), ((), ())),
        preferred_element_type=jnp.float32)
    h = jnp.maximum(h + b1_ref[...], 0.0)                # bias (H1,1) lane-broadcast

    # fc2: (H2, H1) @ (H1, TM) -> (H2, TM)
    h = jnp.dot(w2_ref[...], h, preferred_element_type=jnp.float32)
    h = jnp.maximum(h + b2_ref[...], 0.0)

    # fc3: (1, H2) @ (H2, TM) -> (1, TM)   (lane-dense output slab)
    y = jnp.dot(w3_ref[...], h, preferred_element_type=jnp.float32)
    y = y + b3_ref[0, 0]                                 # scalar bias from SMEM

    out_ref[...] = jax.nn.sigmoid(y).astype(out_ref.dtype)


@functools.partial(jax.jit, static_argnames=("block_batch",))
def cryptnet_forward(x, params, *, block_batch=4096):
    """x: (B, D) float32; params: PyTorch-layout weights W:(out,in), b:(out,1)."""
    w1, b1 = params["w1"], params["b1"]      # (H1, D),  (H1, 1)
    w2, b2 = params["w2"], params["b2"]      # (H2, H1), (H2, 1)
    w3, b3 = params["w3"], params["b3"]      # (1, H2),  (1, 1)

    B, D = x.shape
    # Batch tile: large for pipelining, but never bigger than the (8-aligned) batch.
    tm = min(_round_up(block_batch, 8), _round_up(B, 8))
    b_pad = _round_up(B, tm)
    if b_pad != B:
        x = jnp.pad(x, ((0, b_pad - B), (0, 0)))         # tail rows are discarded below
    n_tiles = b_pad // tm

    grid_spec = pltpu.PrefetchScalarGridSpec(
        num_scalar_prefetch=0,
        grid=(n_tiles,),
        in_specs=[
            pl.BlockSpec((tm, D), lambda i: (i, 0)),              # x tile (pipelined)
            pl.BlockSpec((H1, D), lambda i: (0, 0)),              # W1 resident
            pl.BlockSpec((H1, 1), lambda i: (0, 0)),              # b1 resident
            pl.BlockSpec((H2, H1), lambda i: (0, 0)),             # W2 resident
            pl.BlockSpec((H2, 1), lambda i: (0, 0)),              # b2 resident
            pl.BlockSpec((OUT, H2), lambda i: (0, 0)),            # W3 resident
            pl.BlockSpec(memory_space=pltpu.MemorySpace.SMEM),    # b3 scalar
        ],
        # lane-dense output: one (1, TM) slab per grid step
        out_specs=pl.BlockSpec((None, 1, tm), lambda i: (i, 0, 0)),
    )

    out = pl.pallas_call(
        cryptnet_kernel,
        out_shape=jax.ShapeDtypeStruct((n_tiles, 1, tm), jnp.float32),
        grid_spec=grid_spec,
        compiler_params=pltpu.CompilerParams(
            dimension_semantics=("parallel",)),   # megacore sharding on v7x
    )(x, w1, b1, w2, b2, w3, b3)

    # (n_tiles, 1, tm) -> (B, 1), dropping any padded tail rows.
    return out.reshape(b_pad, 1)[:B]
    # TODO(synk): optional bf16 cast of x/weights would halve HBM traffic
    # (kernel is mem-bound); kept f32 here to preserve the 1e-5 tolerance check.


def init_params(key, input_shape):
    """Deterministic synthetic init matching nn.Linear shapes (W:(out,in), b:(out,1))."""
    k1, k2, k3, k4, k5, k6 = jax.random.split(key, 6)

    def lin(kw, kb, fan_in, fan_out):
        bound = 1.0 / jnp.sqrt(fan_in)
        w = jax.random.uniform(kw, (fan_out, fan_in), jnp.float32, -bound, bound)
        b = jax.random.uniform(kb, (fan_out, 1), jnp.float32, -bound, bound)
        return w, b

    w1, b1 = lin(k1, k2, input_shape, H1)
    w2, b2 = lin(k3, k4, H1, H2)
    w3, b3 = lin(k5, k6, H2, OUT)
    return {"w1": w1, "b1": b1, "w2": w2, "b2": b2, "w3": w3, "b3": b3}


def reference_forward(x, p):
    h1 = jnp.maximum(x @ p["w1"].T + p["b1"][:, 0], 0.0)
    h2 = jnp.maximum(h1 @ p["w2"].T + p["b2"][:, 0], 0.0)
    return jax.nn.sigmoid(h2 @ p["w3"].T + p["b3"][:, 0])


if __name__ == "__main__":
    key = jax.random.PRNGKey(0)
    kx, kp, kx2 = jax.random.split(key, 3)

    batch, input_shape = 8, 16
    x = jax.random.normal(kx, (batch, input_shape), jnp.float32)
    params = init_params(kp, input_shape)

    out = jax.block_until_ready(cryptnet_forward(x, params))
    ref = reference_forward(x, params)
    assert out.shape == (batch, 1)
    assert jnp.allclose(out, ref, atol=1e-5, rtol=1e-5)

    # Second check: batch not divisible by the tile -> exercises grid + tail padding.
    batch2 = 300
    x2 = jax.random.normal(kx2, (batch2, input_shape), jnp.float32)
    out2 = jax.block_until_ready(cryptnet_forward(x2, params, block_batch=128))
    ref2 = reference_forward(x2, params)
    assert out2.shape == (batch2, 1)
    assert jnp.allclose(out2, ref2, atol=1e-5, rtol=1e-5)

    print("KERNEL_OK")
</pallas_src>

<mosaic_0001>
module attributes {stable_mosaic.version = 11 : i64} {
  func.func @cryptnet_kernel(%arg0: i32, %arg1: memref<8x16xf32, #tpu.memory_space<vmem>>, %arg2: memref<32x16xf32, #tpu.memory_space<vmem>>, %arg3: memref<32x1xf32, #tpu.memory_space<vmem>>, %arg4: memref<32x32xf32, #tpu.memory_space<vmem>>, %arg5: memref<32x1xf32, #tpu.memory_space<vmem>>, %arg6: memref<1x32xf32, #tpu.memory_space<vmem>>, %arg7: memref<1x1xf32, #tpu.memory_space<smem>>, %arg8: memref<1x1x8xf32, #tpu.memory_space<vmem>>) attributes {dimension_semantics = [#tpu.dimension_semantics<parallel>], iteration_bounds = array<i64: 1>, scalar_prefetch = 0 : i64, scratch_operands = 0 : i64, tpu.core_type = #tpu.core_type<tc>, window_params = [{transform_indices = @transform_0, window_bounds = array<i64: 8, 16>}, {pipeline_mode = #tpu.pipeline_mode<synchronous>, transform_indices = @transform_1, window_bounds = array<i64: 32, 16>}, {pipeline_mode = #tpu.pipeline_mode<synchronous>, transform_indices = @transform_2, window_bounds = array<i64: 32, 1>}, {pipeline_mode = #tpu.pipeline_mode<synchronous>, transform_indices = @transform_3, window_bounds = array<i64: 32, 32>}, {pipeline_mode = #tpu.pipeline_mode<synchronous>, transform_indices = @transform_4, window_bounds = array<i64: 32, 1>}, {pipeline_mode = #tpu.pipeline_mode<synchronous>, transform_indices = @transform_5, window_bounds = array<i64: 1, 32>}, {transform_indices = @transform_6, window_bounds = array<i64: 1, 1>}, {transform_indices = @transform_7, window_bounds = array<i64: 1, 1, 8>}]} {
    %c0 = arith.constant 0 : index
    %c0_0 = arith.constant 0 : index
    %0 = vector.load %arg1[%c0, %c0_0] : memref<8x16xf32, #tpu.memory_space<vmem>>, vector<8x16xf32>
    %c0_1 = arith.constant 0 : index
    %c0_2 = arith.constant 0 : index
    %1 = vector.load %arg2[%c0_1, %c0_2] : memref<32x16xf32, #tpu.memory_space<vmem>>, vector<32x16xf32>
    %cst = arith.constant dense<0.000000e+00> : vector<32x8xf32>
    %2 = tpu.matmul %1, %0, %cst {dimension_numbers = #tpu.dot_dimension_numbers<[1], [1], [0], [0], [0, 0, 1, 0], [], []>} : vector<32x16xf32>, vector<8x16xf32>, vector<32x8xf32> -> vector<32x8xf32>
    %c0_3 = arith.constant 0 : index
    %c0_4 = arith.constant 0 : index
    %3 = vector.load %arg3[%c0_3, %c0_4] : memref<32x1xf32, #tpu.memory_space<vmem>>, vector<32x1xf32>
    %4 = vector.broadcast %3 : vector<32x1xf32> to vector<32x8xf32>
    %5 = arith.addf %2, %4 : vector<32x8xf32>
    %cst_5 = arith.constant 0.000000e+00 : f32
    %6 = vector.broadcast %cst_5 : f32 to vector<32x8xf32>
    %7 = arith.maximumf %5, %6 : vector<32x8xf32>
    %c0_6 = arith.constant 0 : index
    %c0_7 = arith.constant 0 : index
    %8 = vector.load %arg4[%c0_6, %c0_7] : memref<32x32xf32, #tpu.memory_space<vmem>>, vector<32x32xf32>
    %cst_8 = arith.constant dense<0.000000e+00> : vector<32x8xf32>
    %9 = tpu.matmul %8, %7, %cst_8 {dimension_numbers = #tpu.dot_dimension_numbers<[1], [0], [0], [1], [0, 0, 1, 1], [], []>} : vector<32x32xf32>, vector<32x8xf32>, vector<32x8xf32> -> vector<32x8xf32>
    %c0_9 = arith.constant 0 : index
    %c0_10 = arith.constant 0 : index
    %10 = vector.load %arg5[%c0_9, %c0_10] : memref<32x1xf32, #tpu.memory_space<vmem>>, vector<32x1xf32>
    %11 = vector.broadcast %10 : vector<32x1xf32> to vector<32x8xf32>
    %12 = arith.addf %9, %11 : vector<32x8xf32>
    %cst_11 = arith.constant 0.000000e+00 : f32
    %13 = vector.broadcast %cst_11 : f32 to vector<32x8xf32>
    %14 = arith.maximumf %12, %13 : vector<32x8xf32>
    %c0_12 = arith.constant 0 : index
    %c0_13 = arith.constant 0 : index
    %15 = vector.load %arg6[%c0_12, %c0_13] : memref<1x32xf32, #tpu.memory_space<vmem>>, vector<1x32xf32>
    %cst_14 = arith.constant dense<0.000000e+00> : vector<1x8xf32>
    %16 = tpu.matmul %15, %14, %cst_14 {dimension_numbers = #tpu.dot_dimension_numbers<[1], [0], [0], [1], [0, 0, 1, 1], [], []>} : vector<1x32xf32>, vector<32x8xf32>, vector<1x8xf32> -> vector<1x8xf32>
    %c0_15 = arith.constant 0 : index
    %c0_16 = arith.constant 0 : index
    %17 = memref.load %arg7[%c0_15, %c0_16] : memref<1x1xf32, #tpu.memory_space<smem>>
    %18 = vector.broadcast %17 : f32 to vector<1x8xf32>
    %19 = arith.addf %16, %18 : vector<1x8xf32>
    %20 = arith.negf %19 : vector<1x8xf32>
    %21 = math.exp %20 : vector<1x8xf32>
    %cst_17 = arith.constant 1.000000e+00 : f32
    %22 = vector.broadcast %cst_17 : f32 to vector<1x8xf32>
    %23 = arith.addf %22, %21 : vector<1x8xf32>
    %24 = arith.divf %22, %23 : vector<1x8xf32>
    %c0_18 = arith.constant 0 : index
    %c0_19 = arith.constant 0 : index
    %c0_20 = arith.constant 0 : index
    %25 = vector.load %arg8[%c0_18, %c0_19, %c0_20] : memref<1x1x8xf32, #tpu.memory_space<vmem>>, vector<1x1x8xf32>
    %26 = vector.shape_cast %25 : vector<1x1x8xf32> to vector<1x8xf32>
    %27 = vector.shape_cast %24 : vector<1x8xf32> to vector<1x1x8xf32>
    tpu.vector_store %arg8[%c0_18, %c0_19, %c0_20], %27 {strides = array<i32>} : memref<1x1x8xf32, #tpu.memory_space<vmem>>, vector<1x1x8xf32>,
    return
  }
  func.func @transform_0(%arg0: i32) -> (i32, i32) {
    %c0_i32 = arith.constant 0 : i32
    %c0_i32_0 = arith.constant 0 : i32
    return %arg0, %c0_i32 : i32, i32
  }
  func.func @transform_1(%arg0: i32) -> (i32, i32) {
    %c0_i32 = arith.constant 0 : i32
    %c0_i32_0 = arith.constant 0 : i32
    %c0_i32_1 = arith.constant 0 : i32
    return %c0_i32, %c0_i32_0 : i32, i32
  }
  func.func @transform_2(%arg0: i32) -> (i32, i32) {
    %c0_i32 = arith.constant 0 : i32
    %c0_i32_0 = arith.constant 0 : i32
    %c0_i32_1 = arith.constant 0 : i32
    return %c0_i32, %c0_i32_0 : i32, i32
  }
  func.func @transform_3(%arg0: i32) -> (i32, i32) {
    %c0_i32 = arith.constant 0 : i32
    %c0_i32_0 = arith.constant 0 : i32
    %c0_i32_1 = arith.constant 0 : i32
    return %c0_i32, %c0_i32_0 : i32, i32
  }
  func.func @transform_4(%arg0: i32) -> (i32, i32) {
    %c0_i32 = arith.constant 0 : i32
    %c0_i32_0 = arith.constant 0 : i32
    %c0_i32_1 = arith.constant 0 : i32
    return %c0_i32, %c0_i32_0 : i32, i32
  }
  func.func @transform_5(%arg0: i32) -> (i32, i32) {
    %c0_i32 = arith.constant 0 : i32
    %c0_i32_0 = arith.constant 0 : i32
    %c0_i32_1 = arith.constant 0 : i32
    return %c0_i32, %c0_i32_0 : i32, i32
  }
  func.func @transform_6(%arg0: i32) -> (i32, i32) {
    %c0_i32 = arith.constant 0 : i32
    %c0_i32_0 = arith.constant 0 : i32
    %c0_i32_1 = arith.constant 0 : i32
    return %c0_i32, %c0_i32_0 : i32, i32
  }
  func.func @transform_7(%arg0: i32) -> (i32, i32, i32) {
    %c0_i32 = arith.constant 0 : i32
    %c0_i32_0 = arith.constant 0 : i32
    %c0_i32_1 = arith.constant 0 : i32
    return %arg0, %c0_i32, %c0_i32_0 : i32, i32, i32
  }
}

</mosaic_0001>

<bundles_post_ra>
// kernel: cryptnet_forward.1
= control target key start
LH: loop header
LB: loop body
LE: loop exit
PB: predicated region body
PF: predicated region fallthrough
CT: control target
= control target key end

     0   :  { %vm57_vm0 = vcmask 130048   ;;  %v501_v4 = vmov 0   ;;  %s626_s0 = inlined_call_operand.vmem [shape: f32[8,16], index: 0, kind: input, shape index: {}]   ;;  %s627_s1 = inlined_call_operand.vmem [shape: f32[32,16], index: 1, kind: input, shape index: {}]   ;;  %s628_s2 = inlined_call_operand.vmem [shape: f32[32,1], index: 2, kind: input, shape index: {}]   ;;  %s629_s3 = inlined_call_operand.vmem [shape: f32[32,32], index: 3, kind: input, shape index: {}]   ;;  %s630_s4 = inlined_call_operand.vmem [shape: f32[32,1], index: 4, kind: input, shape index: {}]   ;;  %s631_s5 = inlined_call_operand.vmem [shape: f32[1,32], index: 5, kind: input, shape index: {}]   ;;  %s632_s6 = inlined_call_operand.<no memory space> [shape: f32[1,1], index: 6, kind: input, shape index: {}]   ;;  %s633_s7 = inlined_call_operand.hbm [shape: f32[1,1,8], index: 7, kind: output, shape index: {}]  }
   0x1   :  { %v28_v0 = vld [vmem:[%s626_s0] sm:$0xff]  ;;  %v30_v3 = vld [vmem:[%s627_s1 + $0x8] sm:$0xff]  ;;  %471 = vset.pattern.permute.xlu0 %v501_v4  ;;  %v35_v5 = vld [vmem:[%s628_s2 + $0x10] sm:$0xff]  ;;  %472 = vset.pattern.permute.xlu1 %v501_v4 }
   0x2   :  { %v29_v1 = vld [vmem:[%s627_s1] sm:$0xff]  ;;  %419 = vmatprep.subr.msk.mxu0 %vm57_vm0, %v28_v0  ;;  %v31_v6 = vld [vmem:[%s627_s1 + $0x10] sm:$0xff]  ;;  %49 = vperm.xlu1 %472, %v35_v5   ;;  %v34_v7 = vld [vmem:[%s628_s2 + $0x8] sm:$0xff] }
   0x3   :  { %421 = vmatprep.mubr.msk.f32.mxu0 %vm57_vm0, %v29_v1  ;;  %v33_v2 = vld [vmem:[%s628_s2] sm:$0xff]  ;;  %420 = vmatpush3.xpose.msk.msra.mxu0 %vm57_vm0, %v28_v0 }
   0x4   :  { %39 = vperm.xlu0 %471, %v33_v2  }
   0x5   :  { %13 = vsyncpa [#allocation4], 0  ;;  %v36_v8 = vld [vmem:[%s628_s2 + $0x18] sm:$0xff]  ;;  %v166_v10 = vld [vmem:[%s630_s4] sm:$0xff]  ;;  %vm190_vm1 = vcmask 261120   ;;  %v502_v36 = vmov 0.0|0.0   ;;  %v294_v57 = vstv %s632_s6 }
   0x6   :  { %422 = vmatmul.mubr.msk.f32.vlgmr.msra.gmra.mrb[0].mxu0 %vm57_vm0, %v30_v3  ;;  %v32_v9 = vld [vmem:[%s627_s1 + $0x18] sm:$0xff]  ;;  %54 = vperm.xlu1 %472, %v36_v8   ;;  %v167_v11 = vld [vmem:[%s630_s4 + $0x8] sm:$0xff]  ;;  %v168_v12 = vld [vmem:[%s630_s4 + $0x10] sm:$0xff]  ;;  %vm503_vm2 = vmmov 0   ;;  %v504_v37 = vmov 0.0   ;;  %s505_s10 = smov [#allocation3]  }
   0x7   :  { %424 = vmatprep.mubr.msk.f32.mxu0 %vm57_vm0, %v31_v6  ;;  %v169_v13 = vld [vmem:[%s630_s4 + $0x18] sm:$0xff]  ;;  %v162_v14 = vld [vmem:[%s629_s3] sm:$0xff]  ;;  %v163_v33 = vld [vmem:[%s629_s3 + $0x8] sm:$0xff]  ;;  %460 = vmatprep.subr.bf16.mxu0 %v502_v36  ;;  %s382_s11 = sshll.u32 %s505_s10, 4  ;;  %vm374_vm3 = vcmask 57344   ;;  %s383_s11 = int_to_ptr.vmem [resolvable:$true] %s382_s11 }
   0x8   :  { %44 = vperm.xlu0 %471, %v34_v7   ;;  %435 = vmatprep.mubr.msk.f32.mxu1 %vm190_vm1, %v162_v14  ;;  %v164_v34 = vld [vmem:[%s629_s3 + $0x10] sm:$0xff]  ;;  %v165_v35 = vld [vmem:[%s629_s3 + $0x18] sm:$0xff]  ;;  %v292_v56 = vld [vmem:[%s631_s5] sm:$0x1]  ;;  %s477_s5 = scalar_lea.vmem %s383_s11, 16  ;;  %s481_s12 = scalar_lea.vmem %s383_s11, 32 }
   0x9   :  { %p478_p0 = scmp.ne.s32.totalorder %s383_s11, %s477_s5  ;;  %p482_p1 = scmp.lt.s32.totalorder %s383_s11, %s383_s11 }
   0xa   :  { %425 = vmatmul.mubr.msk.f32.gmra.mrb[2].mxu0 %vm57_vm0, %v32_v9  ;;  %177 = vperm.xlu1 %472, %v167_v11   ;;  %p483_p2 = scmp.lt.s32.totalorder %s481_s12, %s477_s5 }
   0xb   :  { %449 = vmatprep.mubr.msk.f32.mxu0 %vm503_vm2, %v504_v37 }
   0xc   :  { %172 = vperm.xlu0 %471, %v166_v10   ;;  %p484_p3 = por %p483_p2, %p482_p1 }
   0xe   :  { %187 = vperm.xlu1 %472, %v169_v13   ;;  %p485_p4 = pnand %p484_p3, %p478_p0 }
  0x10   :  { %182 = vperm.xlu0 %471, %v168_v12  }
  0x81   :  { %v50_v16 = vpop.permute.xlu1 %49 }
  0x83   :  { %v40_v15 = vpop.permute.xlu0 %39 }
  0x85   :  { %v55_v23 = vpop.permute.xlu1 %54 }
  0x87   :  { %v45_v17 = vpop.permute.xlu0 %44 }
  0x89   :  { %v178_v38 = vpop.permute.xlu1 %177 }
  0x8b   :  { %v173_v39 = vpop.permute.xlu0 %172 }
  0x8d   :  { %v188_v45 = vpop.permute.xlu1 %187 }
  0x8f   :  { %v183_v48 = vpop.permute.xlu0 %182 }
  0xd9   :  { %v423_v18 = vpop.f32.mrb[0].mxu0 }
  0xda   :  { %v145_v19 = vadd.f32 %v423_v18, %v45_v17  ;;  %v139_v20 = vpop.f32.mrb[1].mxu0 }
  0xdb   :  { %v140_v21 = vadd.f32 %v139_v20, %v40_v15 }
  0xdc   :  { %v159_v22 = vmax.f32 %v145_v19, 0.0 }
  0xdd   :  { %v158_v24 = vmax.f32 %v140_v21, 0.0  ;;  %v426_v25 = vpop.f32.mrb[2].mxu0 }
  0xde   :  { %v155_v26 = vadd.f32 %v426_v25, %v55_v23  ;;  %v149_v27 = vpop.f32.mrb[3].mxu0 }
  0xdf   :  { %v150_v28 = vadd.f32 %v149_v27, %v50_v16  ;;  %v452_v29 = vpack.c.bf16 %v159_v22, %v158_v24 }
  0xe0   :  { %v161_v30 = vmax.f32 %v155_v26, 0.0 }
  0xe1   :  { %v160_v31 = vmax.f32 %v150_v28, 0.0  ;;  %453 = vmatprep.subr.bf16.mxu1 %v452_v29 }
  0xe2   :  { %455 = vmatpush3.bf16.msra.mxu1 %v452_v29 }
  0xe3   :  { %v456_v32 = vpack.c.bf16 %v161_v30, %v160_v31 }
  0xe5   :  { %457 = vmatprep.subr.bf16.mxu1 %v456_v32 }
  0xe6   :  { %459 = vmatpush3.bf16.msra.mxu1 %v456_v32 }
  0xe9   :  { %436 = vmatmul.mubr.msk.f32.vlgmr.msra.gmra.mrb[0].mxu1 %vm190_vm1, %v163_v33 }
  0xea   :  { %438 = vmatprep.mubr.msk.f32.mxu1 %vm190_vm1, %v164_v34 }
  0xed   :  { %439 = vmatmul.mubr.msk.f32.gmra.mrb[2].mxu1 %vm190_vm1, %v165_v35 }
 0x1bc   :  { %v437_v40 = vpop.f32.mrb[0].mxu1 }
 0x1bd   :  { %v275_v41 = vadd.f32 %v437_v40, %v178_v38  ;;  %v269_v42 = vpop.f32.mrb[1].mxu1 }
 0x1be   :  { %v270_v43 = vadd.f32 %v269_v42, %v173_v39 }
 0x1bf   :  { %v289_v44 = vmax.f32 %v275_v41, 0.0 }
 0x1c0   :  { %v288_v46 = vmax.f32 %v270_v43, 0.0  ;;  %v440_v47 = vpop.f32.mrb[2].mxu1 }
 0x1c1   :  { %v285_v49 = vadd.f32 %v440_v47, %v188_v45  ;;  %v279_v50 = vpop.f32.mrb[3].mxu1 }
 0x1c2   :  { %v461_v51 = vpack.c.bf16 %v289_v44, %v288_v46  ;;  %v280_v52 = vadd.f32 %v279_v50, %v183_v48 }
 0x1c3   :  { %v291_v53 = vmax.f32 %v285_v49, 0.0 }
 0x1c4   :  { %v290_v54 = vmax.f32 %v280_v52, 0.0  ;;  %462 = vmatpush3.bf16.msra.mxu0 %v461_v51 }
 0x1c5   :  { %463 = vmatprep.subr.bf16.mxu0 %v502_v36 }
 0x1c6   :  { %v464_v55 = vpack.c.bf16 %v291_v53, %v290_v54 }
 0x1c8   :  { %465 = vmatpush3.bf16.msra.mxu0 %v464_v55 }
 0x1cb   :  { %450 = vmatmul.mubr.msk.f32.vlgmr.msra.gmra.mrb[4].mxu0 %vm190_vm1, %v292_v56 }
 0x29e   :  { %v364_v58 = vpop.f32.mrb[4].mxu0 }
 0x29f   :  { %v365_v59 = vadd.f32 %v364_v58, %v294_v57  ;;  %v451_v60 = vpop.f32.mrb[5].mxu0 }
 0x2a1   :  { %v400_v61 = vmul.f32 -1.442695, %v365_v59 }
 0x2a3   :  { %473 = vpow2.f32 %v400_v61 }
 0x2ad   :  { %v474_v62 = vpop.eup %473 }
 0x2ae   :  { %v371_v63 = vadd.f32 1.0, %v474_v62 }
 0x2b0   :  { %475 = vrcp.f32 %v371_v63 }
 0x2ba   :  { %v476_v0 = vpop.eup %475 }
 0x2bb   :  { %375 = vst.msk [vmem:[#allocation3] sm:$0x1] %vm374_vm3, %v476_v0 }
 0x2bc   :  { %488 = shalt.err (!%p485_p4)
}
 0x2bd   :  { %s489_s14 = scalar_lea.hbm %s633_s7, 16 }
 0x2be   :  { %p490_p5 = scmp.ne.s32.totalorder %s633_s7, %s489_s14  ;;  %p493_p6 = scmp.lt.u32.totalorder %s489_s14, %s633_s7 }
 0x2c0   :  { %p495_p7 = pnand %p493_p6, %p490_p5 }
 0x2c2   :  { %498 = shalt.err (!%p495_p7)
}
 0x2c3   :  { %385 = dma.vmem_to_hbm [thread:$0]  %s383_s11, 16, %s633_s7, [#allocation4]  }
 0x2c4   :  { %499 = dma.done.wait [#allocation4], 16  }
 0x2c5   :  { %500 = vsyncadd [#allocation4], 4294967280 }
 0x2c6   :  { %389 = vsyncpa [#allocation4], 1 }

</bundles_post_ra>
